<compile_context>
chip_gen: v7x
topology: tpu7x:2x2x1
jax: 0.10.0
libtpu: 0.0.40
codegen_flags: <defaults>
</compile_context>

<pallas_src>
import jax
import jax.numpy as jnp
from jax.experimental import pallas as pl
from jax.experimental.pallas import tpu as pltpu

HIDDEN = 32
VOCAB_RT = 24
VOCAB_RE = 32
VOCAB_RM = 40
BATCH = 16


def _encoder_lin_kernel(xh_ref, w_ref, out_ref):
    """xh_ref: (B,128) = [idx floats in lanes 0..2 | zeros | hidden in lanes 96..127]
       w_ref : (129,H) = [G (96,H) ; P_hid (H,H) ; bP (1,H)]
       out   : (B,H)   = [onehot96 | hidden] @ [G ; P_hid] + bP
    """
    B, K = xh_ref.shape                 # (16, 128)
    H = out_ref.shape[1]                # 32
    Vtot = K - H                        # 96

    xh = xh_ref[...]                                                   # (B, 128) f32
    # Recover combined-vocab indices (exact small integers stored as f32 in lanes 0..2).
    idx0 = xh[:, 0:1].astype(jnp.int32)
    idx1 = xh[:, 1:2].astype(jnp.int32)
    idx2 = xh[:, 2:3].astype(jnp.int32)

    col = jax.lax.broadcasted_iota(jnp.int32, (B, K), 1)
    onehot = ((col == idx0) | (col == idx1) | (col == idx2)).astype(jnp.float32)  # 3 ones/row, lanes < 96

    # Lanes 0..95: one-hot selector (discards the idx floats); lanes 96..127: hidden state.
    x = jnp.where(col < Vtot, onehot, xh)                              # (B, 128)

    # Single lane-full MXU pass + bias row.
    out_ref[...] = (jnp.dot(x, w_ref[0:K, :], preferred_element_type=jnp.float32)
                    + w_ref[K:K + 1, :])


def init_params(key, hidden_size=HIDDEN, vocab_rt=VOCAB_RT, vocab_re=VOCAB_RE, vocab_rm=VOCAB_RM):
    H = hidden_size
    ks = jax.random.split(key, 5)

    def u(k, shape, scale=0.1):
        return jax.random.uniform(k, shape, jnp.float32, -scale, scale)

    return dict(
        E1=u(ks[0], (vocab_rt, H), 1.0),
        E2=u(ks[1], (vocab_re, H), 1.0),
        E3=u(ks[2], (vocab_rm, H), 1.0),
        W=u(ks[3], (3 * H, H)),
        b=u(ks[4], (H,)),
    )


def pack_params(params):
    """One-time host-side folding of the whole weight chain into a single (Vtot+H+1, H) buffer."""
    E1, E2, E3, W, b = params["E1"], params["E2"], params["E3"], params["W"], params["b"]
    H = W.shape[1]
    V1, V2, V3 = E1.shape[0], E2.shape[0], E3.shape[0]
    Vtot = V1 + V2 + V3

    # AvgPool1d(kernel=3, stride=2, padding=1, count_include_pad=True) over length 2H as a matrix.
    row = jnp.arange(2 * H)[:, None]
    colj = jnp.arange(H)[None, :]
    P = jnp.where(jnp.abs(row - 2 * colj) <= 1, 1.0 / 3.0, 0.0).astype(jnp.float32)  # (2H, H)
    P_emb, P_hid = P[:H], P[H:]

    # G = blockdiag(E1,E2,E3) @ W @ P_emb, computed block-wise.
    WP = W @ P_emb                                                      # (3H, H)
    G = jnp.concatenate([E1 @ WP[0:H], E2 @ WP[H:2 * H], E3 @ WP[2 * H:]], axis=0)  # (Vtot, H)
    bP = b.reshape(1, H) @ P_emb                                        # (1, H)

    wpack = jnp.concatenate([G, P_hid, bP], axis=0).astype(jnp.float32)  # (Vtot + H + 1, H)
    return dict(wpack=wpack, off_re=V1, off_rm=V1 + V2, hidden_size=H, vtot=Vtot)


def encoder_lin_forward(packed, rt, re, rm, hidden):
    B = rt.shape[0]
    H = packed["hidden_size"]
    Vtot = packed["vtot"]
    K = Vtot + H                                                        # 128 -> lane-full contraction
    wpack = packed["wpack"]

    B_pad = ((B + 7) // 8) * 8

    # Combined-vocab indices as exact small floats (values < 96, exactly representable in f32).
    idx_f = jnp.stack(
        [rt.astype(jnp.float32),
         re.astype(jnp.float32) + float(packed["off_re"]),
         rm.astype(jnp.float32) + float(packed["off_rm"])], axis=1)     # (B, 3)

    # One packed activation buffer: [idx | 0 ... 0 | hidden]  -> single input DMA.
    xh = jnp.zeros((B_pad, K), jnp.float32)
    xh = xh.at[:B, 0:3].set(idx_f)
    xh = xh.at[:B, Vtot:K].set(hidden.astype(jnp.float32))

    out = pl.pallas_call(
        _encoder_lin_kernel,
        out_shape=jax.ShapeDtypeStruct((B_pad, H), jnp.float32),
        grid=(1,),                                                      # single step: no pipeline/core-split overhead
        in_specs=[
            pl.BlockSpec((B_pad, K), lambda i: (0, 0)),
            pl.BlockSpec(wpack.shape, lambda i: (0, 0)),
        ],
        out_specs=pl.BlockSpec((B_pad, H), lambda i: (0, 0)),
        compiler_params=pltpu.CompilerParams(dimension_semantics=("arbitrary",)),
    )(xh, wpack)
    return out[:B]


def init_hidden(batch_size, hidden_size=HIDDEN):
    return jnp.zeros((batch_size, hidden_size), jnp.float32)


def reference_forward(params, rt, re, rm, hidden):
    """Pure-JAX mirror of the PyTorch forward (docEmbedding + cat + AvgPool1d(3,2,1))."""
    e1 = params["E1"][rt]
    e2 = params["E2"][re]
    e3 = params["E3"][rm]
    emb = jnp.concatenate([e1, e2, e3], axis=1) @ params["W"] + params["b"]   # (B, H)
    x = jnp.concatenate([emb, hidden], axis=1)                                # (B, 2H)
    H = hidden.shape[1]
    xp = jnp.pad(x, ((0, 0), (1, 1)))
    pooled = (xp[:, 0:2 * H:2] + xp[:, 1:2 * H + 1:2] + xp[:, 2:2 * H + 2:2]) / 3.0
    return pooled                                                             # (B, H)


if __name__ == "__main__":
    key = jax.random.PRNGKey(0)
    kp, k1, k2, k3, kh = jax.random.split(key, 5)

    params = init_params(kp)
    rt = jax.random.randint(k1, (BATCH,), 0, VOCAB_RT, dtype=jnp.int32)
    re = jax.random.randint(k2, (BATCH,), 0, VOCAB_RE, dtype=jnp.int32)
    rm = jax.random.randint(k3, (BATCH,), 0, VOCAB_RM, dtype=jnp.int32)
    hidden = jax.random.normal(kh, (BATCH, HIDDEN), dtype=jnp.float32)

    packed = pack_params(params)
    out = encoder_lin_forward(packed, rt, re, rm, hidden)
    jax.block_until_ready(out)

    ref = reference_forward(params, rt, re, rm, hidden)
    assert out.shape == (BATCH, HIDDEN)
    assert jnp.allclose(out, ref, atol=1e-4, rtol=1e-4)

    print("KERNEL_OK")
</pallas_src>

<mosaic_0001>
module attributes {stable_mosaic.version = 11 : i64} {
  func.func @_encoder_lin_kernel(%arg0: i32, %arg1: memref<16x128xf32, #tpu.memory_space<vmem>>, %arg2: memref<129x32xf32, #tpu.memory_space<vmem>>, %arg3: memref<16x32xf32, #tpu.memory_space<vmem>>) attributes {dimension_semantics = [#tpu.dimension_semantics<arbitrary>], iteration_bounds = array<i64: 1>, scalar_prefetch = 0 : i64, scratch_operands = 0 : i64, tpu.core_type = #tpu.core_type<tc>, window_params = [{pipeline_mode = #tpu.pipeline_mode<synchronous>, transform_indices = @transform_0, window_bounds = array<i64: 16, 128>}, {pipeline_mode = #tpu.pipeline_mode<synchronous>, transform_indices = @transform_1, window_bounds = array<i64: 129, 32>}, {pipeline_mode = #tpu.pipeline_mode<synchronous>, transform_indices = @transform_2, window_bounds = array<i64: 16, 32>}]} {
    %c0 = arith.constant 0 : index
    %c0_0 = arith.constant 0 : index
    %0 = vector.load %arg1[%c0, %c0_0] : memref<16x128xf32, #tpu.memory_space<vmem>>, vector<16x128xf32>
    %1 = vector.extract_strided_slice %0 {offsets = [0, 0], sizes = [16, 1], strides = [1, 1]} : vector<16x128xf32> to vector<16x1xf32>
    %2 = arith.fptosi %1 : vector<16x1xf32> to vector<16x1xi32>
    %3 = vector.extract_strided_slice %0 {offsets = [0, 1], sizes = [16, 1], strides = [1, 1]} : vector<16x128xf32> to vector<16x1xf32>
    %4 = arith.fptosi %3 : vector<16x1xf32> to vector<16x1xi32>
    %5 = vector.extract_strided_slice %0 {offsets = [0, 2], sizes = [16, 1], strides = [1, 1]} : vector<16x128xf32> to vector<16x1xf32>
    %6 = arith.fptosi %5 : vector<16x1xf32> to vector<16x1xi32>
    %7 = tpu.iota {dimensions = array<i32: 1>} : vector<16x128xi32>
    %8 = vector.broadcast %2 : vector<16x1xi32> to vector<16x128xi32>
    %9 = arith.cmpi eq, %7, %8 : vector<16x128xi32>
    %10 = vector.broadcast %4 : vector<16x1xi32> to vector<16x128xi32>
    %11 = arith.cmpi eq, %7, %10 : vector<16x128xi32>
    %12 = arith.ori %9, %11 : vector<16x128xi1>
    %13 = vector.broadcast %6 : vector<16x1xi32> to vector<16x128xi32>
    %14 = arith.cmpi eq, %7, %13 : vector<16x128xi32>
    %15 = arith.ori %12, %14 : vector<16x128xi1>
    %16 = arith.extui %15 : vector<16x128xi1> to vector<16x128xi32>
    %17 = arith.sitofp %16 : vector<16x128xi32> to vector<16x128xf32>
    %c96_i32 = arith.constant 96 : i32
    %18 = vector.broadcast %c96_i32 : i32 to vector<16x128xi32>
    %19 = arith.cmpi slt, %7, %18 : vector<16x128xi32>
    %20 = arith.select %19, %17, %0 : vector<16x128xi1>, vector<16x128xf32>
    %c0_1 = arith.constant 0 : index
    %c0_2 = arith.constant 0 : index
    %21 = vector.load %arg2[%c0_1, %c0_2] : memref<129x32xf32, #tpu.memory_space<vmem>>, vector<128x32xf32>
    %cst = arith.constant dense<0.000000e+00> : vector<16x32xf32>
    %22 = tpu.matmul %20, %21, %cst {dimension_numbers = #tpu.dot_dimension_numbers<[1], [0], [0], [1], [0, 0, 1, 1], [], []>} : vector<16x128xf32>, vector<128x32xf32>, vector<16x32xf32> -> vector<16x32xf32>
    %c128 = arith.constant 128 : index
    %c0_3 = arith.constant 0 : index
    %23 = vector.load %arg2[%c128, %c0_3] : memref<129x32xf32, #tpu.memory_space<vmem>>, vector<1x32xf32>
    %24 = vector.broadcast %23 : vector<1x32xf32> to vector<16x32xf32>
    %25 = arith.addf %22, %24 : vector<16x32xf32>
    %c0_4 = arith.constant 0 : index
    %c0_5 = arith.constant 0 : index
    %26 = vector.load %arg3[%c0_4, %c0_5] : memref<16x32xf32, #tpu.memory_space<vmem>>, vector<16x32xf32>
    tpu.vector_store %arg3[%c0_4, %c0_5], %25 {strides = array<i32>} : memref<16x32xf32, #tpu.memory_space<vmem>>, vector<16x32xf32>,
    return
  }
  func.func @transform_0(%arg0: i32) -> (i32, i32) {
    %c0_i32 = arith.constant 0 : i32
    %c0_i32_0 = arith.constant 0 : i32
    %c0_i32_1 = arith.constant 0 : i32
    return %c0_i32, %c0_i32_0 : i32, i32
  }
  func.func @transform_1(%arg0: i32) -> (i32, i32) {
    %c0_i32 = arith.constant 0 : i32
    %c0_i32_0 = arith.constant 0 : i32
    %c0_i32_1 = arith.constant 0 : i32
    return %c0_i32, %c0_i32_0 : i32, i32
  }
  func.func @transform_2(%arg0: i32) -> (i32, i32) {
    %c0_i32 = arith.constant 0 : i32
    %c0_i32_0 = arith.constant 0 : i32
    %c0_i32_1 = arith.constant 0 : i32
    return %c0_i32, %c0_i32_0 : i32, i32
  }
}

</mosaic_0001>

<bundles_post_ra>
// kernel: tpu_custom_call.1
= control target key start
LH: loop header
LB: loop body
LE: loop exit
PB: predicated region body
PF: predicated region fallthrough
CT: control target
= control target key end

     0   :  { %v297_v3 = vmov 0   ;;  %s396_s0 = inlined_call_operand.vmem [shape: f32[16,128], index: 0, kind: input, shape index: {}]   ;;  %s397_s1 = inlined_call_operand.vmem [shape: f32[129,32], index: 1, kind: input, shape index: {}]   ;;  %s398_s2 = inlined_call_operand.hbm [shape: f32[16,32], index: 2, kind: output, shape index: {}]  }
   0x1   :  { %v322_v0 = vld [vmem:[%s396_s0 + $0x8] sm:$0xff]  ;;  %v327_v1 = vld [vmem:[%s396_s0] sm:$0xff]  ;;  %269 = vset.pattern.permute.xlu1 %v297_v3  ;;  %267 = vset.pattern.permute.xlu0 %v297_v3  ;;  %v55_v7 = vld [vmem:[%s397_s1 + $0x10] sm:$0xff] }
   0x2   :  { %v53_v2 = vld [vmem:[%s397_s1] sm:$0xff]  ;;  %v258_v4 = vtrunc.f32 %v322_v0  ;;  %v256_v5 = vtrunc.f32 %v327_v1  ;;  %v54_v6 = vld [vmem:[%s397_s1 + $0x8] sm:$0xff]  ;;  %v56_v8 = vld [vmem:[%s397_s1 + $0x18] sm:$0xff] }
   0x3   :  { %v224_v9 = vpack.c.bf16 %v54_v6, %v53_v2  ;;  %v228_v12 = vpack.c.bf16 %v56_v8, %v55_v7 }
   0x4   :  { %v259_v10 = vcvt.f32.s32 %v258_v4  ;;  %v257_v11 = vcvt.f32.s32 %v256_v5 }
   0x5   :  { %225 = vmatprep.subr.bf16.mxu0 %v224_v9 }
   0x6   :  { %7 = vsyncpa [#allocation3], 0  ;;  %22 = vperm.xlu1 %269, %v259_v10   ;;  %19 = vperm.xlu0 %267, %v257_v11   ;;  %v57_v13 = vld [vmem:[%s397_s1 + $0x20] sm:$0xff]  ;;  %v58_v14 = vld [vmem:[%s397_s1 + $0x28] sm:$0xff]  ;;  %v298_v16 = vmov 1   ;;  %v299_v20 = vmov 2   ;;  %v16_v35 = vlaneseq }
   0x7   :  { %227 = vmatpush3.bf16.msra.mxu0 %v224_v9  ;;  %v232_v15 = vpack.c.bf16 %v58_v14, %v57_v13  ;;  %v59_v17 = vld [vmem:[%s397_s1 + $0x30] sm:$0xff]  ;;  %v60_v18 = vld [vmem:[%s397_s1 + $0x38] sm:$0xff]  ;;  %v61_v21 = vld [vmem:[%s397_s1 + $0x40] sm:$0xff]  ;;  %v300_v41 = vmov 0.0   ;;  %s301_s18 = smov [#allocation2]   ;;  %vm149_vm11 = vcmask 261120  }
   0x8   :  { %229 = vmatprep.subr.bf16.mxu0 %v228_v12  ;;  %v236_v19 = vpack.c.bf16 %v60_v18, %v59_v17  ;;  %v62_v22 = vld [vmem:[%s397_s1 + $0x48] sm:$0xff]  ;;  %v63_v24 = vld [vmem:[%s397_s1 + $0x50] sm:$0xff]  ;;  %v64_v25 = vld [vmem:[%s397_s1 + $0x58] sm:$0xff]  ;;  %v17_v36 = vand.u32 127, %v16_v35  ;;  %s157_s0 = sshll.u32 %s301_s18, 4  ;;  %s158_s0 = int_to_ptr.vmem [resolvable:$true] %s157_s0 }
   0x9   :  { %v240_v23 = vpack.c.bf16 %v62_v22, %v61_v21  ;;  %v244_v26 = vpack.c.bf16 %v64_v25, %v63_v24  ;;  %v65_v27 = vld [vmem:[%s397_s1 + $0x60] sm:$0xff]  ;;  %v66_v28 = vld [vmem:[%s397_s1 + $0x68] sm:$0xff]  ;;  %v67_v30 = vld [vmem:[%s397_s1 + $0x70] sm:$0xff]  ;;  %s273_s19 = scalar_lea.vmem %s158_s0, 256  ;;  %p278_p1 = scmp.lt.s32.totalorder %s158_s0, %s158_s0 }
   0xa   :  { %270 = vset.pattern.permute.xlu1 %v298_v16  ;;  %268 = vset.pattern.permute.xlu0 %v298_v16  ;;  %v248_v29 = vpack.c.bf16 %v66_v28, %v65_v27  ;;  %v68_v31 = vld [vmem:[%s397_s1 + $0x78] sm:$0xff]  ;;  %vm50_vm8 = vcmp.lt.s32.totalorder %v17_v36, 96  ;;  %v170_v46 = vld [vmem:[%s397_s1 + $0x80] ss:$0 sm:$0xff]  ;;  %p274_p0 = scmp.ne.s32.totalorder %s158_s0, %s273_s19  ;;  %p279_p2 = scmp.lt.s32.totalorder %s273_s19, %s273_s19 }
   0xb   :  { %30 = vperm.xlu1 %270, %v259_v10   ;;  %27 = vperm.xlu0 %268, %v257_v11   ;;  %v252_v32 = vpack.c.bf16 %v68_v31, %v67_v30 }
   0xc   :  { %231 = vmatpush3.bf16.msra.mxu0 %v228_v12  ;;  %p280_p3 = por %p279_p2, %p278_p1 }
   0xd   :  { %233 = vmatprep.subr.bf16.mxu0 %v232_v15 }
   0xe   :  { %p281_p4 = pnand %p280_p3, %p274_p0 }
   0xf   :  { %271 = vset.pattern.permute.xlu1 %v299_v20  ;;  %272 = vset.pattern.permute.xlu0 %v299_v20 }
  0x10   :  { %37 = vperm.xlu1 %271, %v257_v11   ;;  %40 = vperm.xlu0 %272, %v259_v10  }
  0x11   :  { %235 = vmatpush3.bf16.msra.mxu0 %v232_v15 }
  0x12   :  { %237 = vmatprep.subr.bf16.mxu0 %v236_v19 }
  0x15   :  { %239 = vmatpush3.bf16.msra.mxu0 %v236_v19 }
  0x16   :  { %241 = vmatprep.subr.bf16.mxu0 %v240_v23 }
  0x19   :  { %243 = vmatpush3.bf16.msra.mxu0 %v240_v23 }
  0x1a   :  { %245 = vmatprep.subr.bf16.mxu0 %v244_v26 }
  0x1d   :  { %247 = vmatpush3.bf16.msra.mxu0 %v244_v26 }
  0x1e   :  { %249 = vmatprep.subr.bf16.mxu0 %v248_v29 }
  0x21   :  { %251 = vmatpush3.bf16.msra.mxu0 %v248_v29 }
  0x22   :  { %253 = vmatprep.subr.bf16.mxu0 %v252_v32 }
  0x25   :  { %255 = vmatpush3.bf16.msra.mxu0 %v252_v32 }
  0x85   :  { %v23_v33 = vpop.permute.xlu1 %22  ;;  %v20_v34 = vpop.permute.xlu0 %19 }
  0x86   :  { %vm25_vm2 = vcmp.eq.s32.totalorder %v17_v36, %v23_v33  ;;  %vm24_vm3 = vcmp.eq.s32.totalorder %v17_v36, %v20_v34 }
  0x8a   :  { %v31_v37 = vpop.permute.xlu1 %30  ;;  %v28_v38 = vpop.permute.xlu0 %27 }
  0x8b   :  { %vm33_vm0 = vcmp.eq.s32.totalorder %v17_v36, %v31_v37  ;;  %vm32_vm1 = vcmp.eq.s32.totalorder %v17_v36, %v28_v38 }
  0x8c   :  { %vm35_vm4 = vmor %vm25_vm2, %vm33_vm0 }
  0x8d   :  { %vm34_vm5 = vmor %vm24_vm3, %vm32_vm1 }
  0x8f   :  { %v38_v39 = vpop.permute.xlu1 %37  ;;  %v41_v40 = vpop.permute.xlu0 %40 }
  0x90   :  { %vm42_vm6 = vcmp.eq.s32.totalorder %v17_v36, %v38_v39  ;;  %vm43_vm7 = vcmp.eq.s32.totalorder %v17_v36, %v41_v40 }
  0x91   :  { %vm44_vm9 = vmor %vm34_vm5, %vm42_vm6 }
  0x92   :  { %vm45_vm10 = vmor %vm35_vm4, %vm43_vm7  ;;  %v168_v42 = vsel %vm44_vm9, 1.0, %v300_v41 }
  0x93   :  { %v169_v43 = vsel %vm45_vm10, 1.0, %v300_v41  ;;  %v51_v44 = vsel %vm50_vm8, %v168_v42, %v327_v1 }
  0x94   :  { %221 = vmatprep.mubr.f32.mxu0 %v51_v44  ;;  %v52_v45 = vsel %vm50_vm8, %v169_v43, %v322_v0 }
  0x95   :  { %222 = vmatmul.mubr.f32.vlgmr.msra.gmra.mrb[0].mxu0 %v52_v45 }
 0x168   :  { %v223_v47 = vpop.f32.mrb[0].mxu0 }
 0x169   :  { %v146_v48 = vadd.f32 %v223_v47, %v170_v46  ;;  %v140_v49 = vpop.f32.mrb[1].mxu0 }
 0x16a   :  { %v141_v50 = vadd.f32 %v170_v46, %v140_v49 }
 0x16b   :  { %151 = vst.msk [vmem:[#allocation2 + $0x8] sm:$0xff] %vm149_vm11, %v146_v48 }
 0x16c   :  { %150 = vst.msk [vmem:[#allocation2] sm:$0xff] %vm149_vm11, %v141_v50 }
 0x16d   :  { %284 = shalt.err (!%p281_p4)
}
 0x16e   :  { %s285_s1 = scalar_lea.hbm %s398_s2, 256 }
 0x16f   :  { %p286_p5 = scmp.ne.s32.totalorder %s398_s2, %s285_s1  ;;  %p289_p6 = scmp.lt.u32.totalorder %s285_s1, %s398_s2 }
 0x171   :  { %p291_p7 = pnand %p289_p6, %p286_p5 }
 0x173   :  { %294 = shalt.err (!%p291_p7)
}
 0x174   :  { %s302_s26 = smov 128   ;;  %s303_s27 = smov 8  }
 0x175   :  { %163 = dma.vmem_to_hbm [thread:$0]  %s158_s0, 256, %s398_s2, [#allocation3], %s302_s26, %s302_s26, %s303_s27  }
 0x176   :  { %295 = dma.done.wait [#allocation3], 256  }
 0x177   :  { %296 = vsyncadd [#allocation3], 4294967040 }
 0x178   :  { %167 = vsyncpa [#allocation3], 1 }

</bundles_post_ra>
